<compile_context>
chip_gen: v7x
topology: tpu7x:2x2x1
jax: 0.10.0
libtpu: 0.0.40
codegen_flags: <defaults>
</compile_context>

<pallas_src>
import jax
import jax.numpy as jnp
from jax.experimental import pallas as pl
from jax.experimental.pallas import tpu as pltpu


# ----------------------------------------------------------------------------- kernels
def _patch_gemm_kernel(x_ref, w_ref, b_ref, o_ref):
    # Whole-K GEMM with fused bias epilogue.
    # x_ref: (tm, K)  w_ref: (K, tn)  b_ref: (1, tn) fp32  o_ref: (tm, tn)
    acc = jnp.dot(x_ref[...], w_ref[...], preferred_element_type=jnp.float32)
    o_ref[...] = (acc + b_ref[...]).astype(o_ref.dtype)


def _patch_gemm_kernel_ksplit(x_ref, w_ref, b_ref, o_ref, acc_ref):
    # K-split GEMM: fp32 accumulator scratch, init on first k-step,
    # bias + cast + store on the last k-step (reduction axis is last in grid).
    k = pl.program_id(2)

    @pl.when(k == 0)
    def _():
        acc_ref[...] = jnp.zeros_like(acc_ref)

    acc_ref[...] += jnp.dot(x_ref[...], w_ref[...],
                            preferred_element_type=jnp.float32)

    @pl.when(k == pl.num_programs(2) - 1)
    def _():
        o_ref[...] = (acc_ref[...] + b_ref[...]).astype(o_ref.dtype)


# ----------------------------------------------------------------------------- wrapper
def _pick_tile(dim, pref, align):
    """Full-dim block for small dims; otherwise an aligned tile (Pallas masks the
    partial last block)."""
    if dim <= pref:
        return dim
    return max(align, (pref // align) * align)


def _pick_k_tile(K, max_whole_k=4096):
    """Return None to keep K whole inside the block, else an exact divisor tile."""
    if K <= max_whole_k:
        return None
    for tk in (4096, 2048, 1024, 512, 256):
        if K % tk == 0:
            return tk
    return None  # no clean divisor -> keep whole (still correct, just larger blocks)


def pallas_patch_gemm(patches, w, bias, *, out_dtype, tm_pref=256, tn_pref=256):
    """patches: (M, K), w: (K, E), bias: (E,) -> (M, E) = patches @ w + bias."""
    M, K = patches.shape
    E = w.shape[1]
    tm = _pick_tile(M, tm_pref, 8)      # sublane-aligned row tile
    tn = _pick_tile(E, tn_pref, 128)    # lane-dense (multiple of 128) output tile
    b2d = bias.astype(jnp.float32).reshape(1, E)

    tk = _pick_k_tile(K)
    if tk is None:
        # --- whole-K path: no reduction axis, pure (parallel, parallel) grid.
        grid = (pl.cdiv(M, tm), pl.cdiv(E, tn))
        return pl.pallas_call(
            _patch_gemm_kernel,
            out_shape=jax.ShapeDtypeStruct((M, E), out_dtype),
            grid=grid,
            in_specs=[
                pl.BlockSpec((tm, K), lambda i, j: (i, 0)),
                pl.BlockSpec((K, tn), lambda i, j: (0, j)),
                pl.BlockSpec((1, tn), lambda i, j: (0, j)),
            ],
            out_specs=pl.BlockSpec((tm, tn), lambda i, j: (i, j)),
            compiler_params=pltpu.CompilerParams(
                dimension_semantics=("parallel", "parallel")),
        )(patches, w, b2d)

    # --- K-split path: reduction axis last, fp32 accumulator scratch.
    grid = (pl.cdiv(M, tm), pl.cdiv(E, tn), K // tk)
    return pl.pallas_call(
        _patch_gemm_kernel_ksplit,
        out_shape=jax.ShapeDtypeStruct((M, E), out_dtype),
        grid=grid,
        in_specs=[
            pl.BlockSpec((tm, tk), lambda i, j, k: (i, k)),
            pl.BlockSpec((tk, tn), lambda i, j, k: (k, j)),
            pl.BlockSpec((1, tn), lambda i, j, k: (0, j)),
        ],
        out_specs=pl.BlockSpec((tm, tn), lambda i, j, k: (i, j)),
        scratch_shapes=[pltpu.VMEM((tm, tn), jnp.float32)],
        compiler_params=pltpu.CompilerParams(
            dimension_semantics=("parallel", "parallel", "arbitrary")),
    )(patches, w, b2d)


def patch_embed_forward(x, weight, bias, *, patch_size, tubelet_size,
                        compute_dtype=None):
    """Reproduces PatchEmbed.forward.

    x      : (B, C, T, H, W)
    weight : (E, C, tubelet, pH, pW)   (PyTorch Conv3d layout)
    bias   : (E,)
    returns: (B, N, E) with N = (T//t) * (H//pH) * (W//pW)
    """
    B, C, T, H, W = x.shape
    pt = int(tubelet_size)
    ph, pw = patch_size
    Tn, Hn, Wn = T // pt, H // ph, W // pw
    E = weight.shape[0]
    K = C * pt * ph * pw

    # im2col — pure re-layout (stride == kernel, no overlap):
    # (B, C, Tn, pt, Hn, ph, Wn, pw) -> (B, Tn, Hn, Wn, C, pt, ph, pw)
    xp = x.reshape(B, C, Tn, pt, Hn, ph, Wn, pw)
    xp = jnp.transpose(xp, (0, 2, 4, 6, 1, 3, 5, 7))
    patches = xp.reshape(B * Tn * Hn * Wn, K)

    # Conv3d weight (E, C, pt, ph, pw) -> GEMM weight (K, E); K-ordering matches
    # the (C, pt, ph, pw) flatten order of `patches`.
    w2 = weight.reshape(E, K).T

    if compute_dtype is not None:  # e.g. jnp.bfloat16 on v6e/v7x; fp32 accumulate inside
        patches = patches.astype(compute_dtype)
        w2 = w2.astype(compute_dtype)

    out2d = pallas_patch_gemm(patches, w2, bias, out_dtype=x.dtype)
    return out2d.reshape(B, Tn * Hn * Wn, E)


# ----------------------------------------------------------------------------- reference
def patch_embed_ref(x, weight, bias, patch_size, tubelet_size):
    out = jax.lax.conv_general_dilated(
        x, weight,
        window_strides=(int(tubelet_size), patch_size[0], patch_size[1]),
        padding="VALID",
        dimension_numbers=("NCDHW", "OIDHW", "NCDHW"))
    out = out + bias.reshape(1, -1, 1, 1, 1)
    B, E = out.shape[0], out.shape[1]
    return out.reshape(B, E, -1).transpose(0, 2, 1)


# ----------------------------------------------------------------------------- main
if __name__ == "__main__":
    # Small shapes consistent with the module (real AST: C=3, T=16, 224x224, p=16, E=768).
    B, C_in = 2, 3
    T, Hs, Ws = 4, 16, 16
    tubelet, patch = 2, 8
    E = 32

    key = jax.random.PRNGKey(0)
    kx, kw, kb = jax.random.split(key, 3)

    x = jax.random.normal(kx, (B, C_in, T, Hs, Ws), dtype=jnp.float32)
    K = C_in * tubelet * patch * patch
    weight = jax.random.normal(
        kw, (E, C_in, tubelet, patch, patch), dtype=jnp.float32) * (K ** -0.5)
    bias = 0.1 * jax.random.normal(kb, (E,), dtype=jnp.float32)

    fwd = jax.jit(lambda xx: patch_embed_forward(
        xx, weight, bias, patch_size=(patch, patch), tubelet_size=tubelet))
    out = jax.block_until_ready(fwd(x))

    ref = patch_embed_ref(x, weight, bias, (patch, patch), tubelet)
    N = (T // tubelet) * (Hs // patch) * (Ws // patch)
    assert out.shape == (B, N, E), out.shape
    assert jnp.allclose(out, ref, atol=1e-4, rtol=1e-4), \
        float(jnp.max(jnp.abs(out - ref)))

    print("KERNEL_OK")
</pallas_src>

<mosaic_0001>
module attributes {stable_mosaic.version = 11 : i64} {
  func.func @_patch_gemm_kernel(%arg0: i32, %arg1: i32, %arg2: memref<16x384xf32, #tpu.memory_space<vmem>>, %arg3: memref<384x32xf32, #tpu.memory_space<vmem>>, %arg4: memref<1x32xf32, #tpu.memory_space<vmem>>, %arg5: memref<16x32xf32, #tpu.memory_space<vmem>>) attributes {dimension_semantics = [#tpu.dimension_semantics<parallel>, #tpu.dimension_semantics<parallel>], iteration_bounds = array<i64: 1, 1>, scalar_prefetch = 0 : i64, scratch_operands = 0 : i64, tpu.core_type = #tpu.core_type<tc>, window_params = [{transform_indices = @transform_0, window_bounds = array<i64: 16, 384>}, {transform_indices = @transform_1, window_bounds = array<i64: 384, 32>}, {transform_indices = @transform_2, window_bounds = array<i64: 1, 32>}, {transform_indices = @transform_3, window_bounds = array<i64: 16, 32>}]} {
    %c0 = arith.constant 0 : index
    %c0_0 = arith.constant 0 : index
    %0 = vector.load %arg2[%c0, %c0_0] : memref<16x384xf32, #tpu.memory_space<vmem>>, vector<16x384xf32>
    %c0_1 = arith.constant 0 : index
    %c0_2 = arith.constant 0 : index
    %1 = vector.load %arg3[%c0_1, %c0_2] : memref<384x32xf32, #tpu.memory_space<vmem>>, vector<384x32xf32>
    %cst = arith.constant dense<0.000000e+00> : vector<16x32xf32>
    %2 = tpu.matmul %0, %1, %cst {dimension_numbers = #tpu.dot_dimension_numbers<[1], [0], [0], [1], [0, 0, 1, 1], [], []>} : vector<16x384xf32>, vector<384x32xf32>, vector<16x32xf32> -> vector<16x32xf32>
    %c0_3 = arith.constant 0 : index
    %c0_4 = arith.constant 0 : index
    %3 = vector.load %arg4[%c0_3, %c0_4] : memref<1x32xf32, #tpu.memory_space<vmem>>, vector<1x32xf32>
    %4 = vector.broadcast %3 : vector<1x32xf32> to vector<16x32xf32>
    %5 = arith.addf %2, %4 : vector<16x32xf32>
    %c0_5 = arith.constant 0 : index
    %c0_6 = arith.constant 0 : index
    %6 = vector.load %arg5[%c0_5, %c0_6] : memref<16x32xf32, #tpu.memory_space<vmem>>, vector<16x32xf32>
    tpu.vector_store %arg5[%c0_5, %c0_6], %5 {strides = array<i32>} : memref<16x32xf32, #tpu.memory_space<vmem>>, vector<16x32xf32>,
    return
  }
  func.func @transform_0(%arg0: i32, %arg1: i32) -> (i32, i32) {
    %c0_i32 = arith.constant 0 : i32
    %c0_i32_0 = arith.constant 0 : i32
    return %arg0, %c0_i32 : i32, i32
  }
  func.func @transform_1(%arg0: i32, %arg1: i32) -> (i32, i32) {
    %c0_i32 = arith.constant 0 : i32
    %c0_i32_0 = arith.constant 0 : i32
    return %c0_i32, %arg1 : i32, i32
  }
  func.func @transform_2(%arg0: i32, %arg1: i32) -> (i32, i32) {
    %c0_i32 = arith.constant 0 : i32
    %c0_i32_0 = arith.constant 0 : i32
    return %c0_i32, %arg1 : i32, i32
  }
  func.func @transform_3(%arg0: i32, %arg1: i32) -> (i32, i32) {
    %c0_i32 = arith.constant 0 : i32
    return %arg0, %arg1 : i32, i32
  }
}

</mosaic_0001>

<bundles_post_ra>
// kernel: _lambda_.1
= control target key start
LH: loop header
LB: loop body
LE: loop exit
PB: predicated region body
PF: predicated region fallthrough
CT: control target
= control target key end

     0   :  { %s628_s0 = inlined_call_operand.vmem [shape: f32[16,384], index: 0, kind: input, shape index: {}]   ;;  %s629_s1 = inlined_call_operand.vmem [shape: f32[384,32], index: 1, kind: input, shape index: {}]   ;;  %s630_s2 = inlined_call_operand.vmem [shape: f32[1,32], index: 2, kind: input, shape index: {}]   ;;  %s631_s3 = inlined_call_operand.hbm [shape: f32[16,32], index: 3, kind: output, shape index: {}]  }
   0x1   :  { %v37_v0 = vld [vmem:[%s629_s1 + $0x80] sm:$0xff]  ;;  %v38_v1 = vld [vmem:[%s629_s1 + $0x88] sm:$0xff]  ;;  %v39_v5 = vld [vmem:[%s629_s1 + $0x90] sm:$0xff] }
   0x2   :  { %v21_v2 = vld [vmem:[%s629_s1] sm:$0xff]  ;;  %v337_v3 = vpack.c.bf16 %v38_v1, %v37_v0  ;;  %v22_v4 = vld [vmem:[%s629_s1 + $0x8] sm:$0xff]  ;;  %v40_v6 = vld [vmem:[%s629_s1 + $0x98] sm:$0xff] }
   0x3   :  { %v339_v7 = vpack.c.bf16 %v22_v4, %v21_v2  ;;  %v341_v8 = vpack.c.bf16 %v40_v6, %v39_v5  ;;  %v53_v9 = vld [vmem:[%s629_s1 + $0x100] sm:$0xff]  ;;  %v54_v10 = vld [vmem:[%s629_s1 + $0x108] sm:$0xff]  ;;  %v23_v11 = vld [vmem:[%s629_s1 + $0x10] sm:$0xff] }
   0x4   :  { %338 = vmatprep.subr.bf16.mxu0 %v337_v3  ;;  %v369_v12 = vpack.c.bf16 %v54_v10, %v53_v9  ;;  %v24_v13 = vld [vmem:[%s629_s1 + $0x18] sm:$0xff]  ;;  %v41_v14 = vld [vmem:[%s629_s1 + $0xa0] sm:$0xff]  ;;  %v42_v15 = vld [vmem:[%s629_s1 + $0xa8] sm:$0xff] }
   0x5   :  { %340 = vmatpush3.bf16.msra.mxu0 %v339_v7  ;;  %v343_v16 = vpack.c.bf16 %v24_v13, %v23_v11  ;;  %v55_v17 = vld [vmem:[%s629_s1 + $0x110] sm:$0xff]  ;;  %v56_v18 = vld [vmem:[%s629_s1 + $0x118] sm:$0xff]  ;;  %v345_v19 = vpack.c.bf16 %v42_v15, %v41_v14  ;;  %v25_v21 = vld [vmem:[%s629_s1 + $0x20] sm:$0xff] }
   0x6   :  { %342 = vmatprep.subr.bf16.mxu0 %v341_v8  ;;  %370 = vmatprep.subr.bf16.mxu1 %v369_v12  ;;  %v373_v20 = vpack.c.bf16 %v56_v18, %v55_v17  ;;  %v26_v22 = vld [vmem:[%s629_s1 + $0x28] sm:$0xff]  ;;  %v43_v23 = vld [vmem:[%s629_s1 + $0xb0] sm:$0xff]  ;;  %v44_v24 = vld [vmem:[%s629_s1 + $0xb8] sm:$0xff] }
   0x7   :  { %372 = vmatpush3.bf16.msra.mxu1 %v369_v12  ;;  %v57_v25 = vld [vmem:[%s629_s1 + $0x120] sm:$0xff]  ;;  %v58_v26 = vld [vmem:[%s629_s1 + $0x128] sm:$0xff]  ;;  %v347_v28 = vpack.c.bf16 %v26_v22, %v25_v21  ;;  %v59_v29 = vld [vmem:[%s629_s1 + $0x130] sm:$0xff]  ;;  %v349_v31 = vpack.c.bf16 %v44_v24, %v43_v23 }
   0x8   :  { %374 = vmatprep.subr.bf16.mxu1 %v373_v20  ;;  %v377_v27 = vpack.c.bf16 %v58_v26, %v57_v25  ;;  %v60_v30 = vld [vmem:[%s629_s1 + $0x138] sm:$0xff]  ;;  %v27_v32 = vld [vmem:[%s629_s1 + $0x30] sm:$0xff]  ;;  %v45_v34 = vld [vmem:[%s629_s1 + $0xc0] sm:$0xff] }
   0x9   :  { %344 = vmatpush3.bf16.msra.mxu0 %v343_v16  ;;  %v28_v33 = vld [vmem:[%s629_s1 + $0x38] sm:$0xff]  ;;  %v46_v35 = vld [vmem:[%s629_s1 + $0xc8] sm:$0xff]  ;;  %v381_v36 = vpack.c.bf16 %v60_v30, %v59_v29  ;;  %v61_v38 = vld [vmem:[%s629_s1 + $0x140] sm:$0xff] }
   0xa   :  { %346 = vmatprep.subr.bf16.mxu0 %v345_v19  ;;  %v351_v37 = vpack.c.bf16 %v28_v33, %v27_v32  ;;  %v62_v39 = vld [vmem:[%s629_s1 + $0x148] sm:$0xff]  ;;  %v353_v40 = vpack.c.bf16 %v46_v35, %v45_v34  ;;  %v29_v41 = vld [vmem:[%s629_s1 + $0x40] sm:$0xff]  ;;  %v47_v43 = vld [vmem:[%s629_s1 + $0xd0] sm:$0xff] }
   0xb   :  { %376 = vmatpush3.bf16.msra.mxu1 %v373_v20  ;;  %v30_v42 = vld [vmem:[%s629_s1 + $0x48] sm:$0xff]  ;;  %v48_v44 = vld [vmem:[%s629_s1 + $0xd8] sm:$0xff]  ;;  %v385_v45 = vpack.c.bf16 %v62_v39, %v61_v38  ;;  %v63_v48 = vld [vmem:[%s629_s1 + $0x150] sm:$0xff] }
   0xc   :  { %378 = vmatprep.subr.bf16.mxu1 %v377_v27  ;;  %v16_v46 = vld [vmem:[%s628_s0 + $0x8] sm:$0xff]  ;;  %v355_v47 = vpack.c.bf16 %v30_v42, %v29_v41  ;;  %v64_v49 = vld [vmem:[%s629_s1 + $0x158] sm:$0xff]  ;;  %v357_v50 = vpack.c.bf16 %v48_v44, %v47_v43  ;;  %v31_v51 = vld [vmem:[%s629_s1 + $0x50] sm:$0xff] }
   0xd   :  { %348 = vmatpush3.bf16.msra.mxu0 %v347_v28  ;;  %140 = vmatprep.mubr.f32.mxu0 %v16_v46  ;;  %v32_v52 = vld [vmem:[%s629_s1 + $0x58] sm:$0xff]  ;;  %v17_v53 = vld [vmem:[%s628_s0 + $0x10] sm:$0xff]  ;;  %v49_v54 = vld [vmem:[%s629_s1 + $0xe0] sm:$0xff] }
   0xe   :  { %350 = vmatprep.subr.bf16.mxu0 %v349_v31  ;;  %v50_v55 = vld [vmem:[%s629_s1 + $0xe8] sm:$0xff]  ;;  %334 = vmatprep.mubr.f32.mxu1 %v17_v53 }
   0xf   :  { %380 = vmatpush3.bf16.msra.mxu1 %v377_v27 }
  0x10   :  { %382 = vmatprep.subr.bf16.mxu1 %v381_v36 }
  0x11   :  { %352 = vmatpush3.bf16.msra.mxu0 %v351_v37 }
  0x12   :  { %354 = vmatprep.subr.bf16.mxu0 %v353_v40 }
  0x13   :  { %384 = vmatpush3.bf16.msra.mxu1 %v381_v36 }
  0x14   :  { %8 = vsyncpa [#allocation3], 0  ;;  %386 = vmatprep.subr.bf16.mxu1 %v385_v45  ;;  %v389_v56 = vpack.c.bf16 %v64_v49, %v63_v48  ;;  %v359_v57 = vpack.c.bf16 %v32_v52, %v31_v51  ;;  %v65_v58 = vld [vmem:[%s629_s1 + $0x160] sm:$0xff]  ;;  %v66_v59 = vld [vmem:[%s629_s1 + $0x168] sm:$0xff]  ;;  %v361_v60 = vpack.c.bf16 %v50_v55, %v49_v54  ;;  %vm226_vm0 = vcmask 261120   ;;  %s428_s13 = smov [#allocation2]  }
  0x15   :  { %356 = vmatpush3.bf16.msra.mxu0 %v355_v47  ;;  %v33_v61 = vld [vmem:[%s629_s1 + $0x60] sm:$0xff]  ;;  %v34_v62 = vld [vmem:[%s629_s1 + $0x68] sm:$0xff]  ;;  %v51_v63 = vld [vmem:[%s629_s1 + $0xf0] sm:$0xff]  ;;  %v393_v1 = vpack.c.bf16 %v66_v59, %v65_v58  ;;  %s234_s14 = sshll.u32 %s428_s13, 4  ;;  %s235_s14 = int_to_ptr.vmem [resolvable:$true] %s234_s14 }
  0x16   :  { %358 = vmatprep.subr.bf16.mxu0 %v357_v50  ;;  %v52_v0 = vld [vmem:[%s629_s1 + $0xf8] sm:$0xff]  ;;  %v363_v2 = vpack.c.bf16 %v34_v62, %v33_v61  ;;  %v67_v3 = vld [vmem:[%s629_s1 + $0x170] sm:$0xff]  ;;  %v15_v10 = vld [vmem:[%s628_s0] sm:$0xff]  ;;  %p409_p1 = scmp.lt.s32.totalorder %s235_s14, %s235_s14 }
  0x17   :  { %388 = vmatpush3.bf16.msra.mxu1 %v385_v45  ;;  %v68_v4 = vld [vmem:[%s629_s1 + $0x178] sm:$0xff]  ;;  %v365_v5 = vpack.c.bf16 %v52_v0, %v51_v63  ;;  %v35_v6 = vld [vmem:[%s629_s1 + $0x70] sm:$0xff]  ;;  %v19_v11 = vld [vmem:[%s628_s0 + $0x20] sm:$0xff] }
  0x18   :  { %390 = vmatprep.subr.bf16.mxu1 %v389_v56  ;;  %v36_v7 = vld [vmem:[%s629_s1 + $0x78] sm:$0xff]  ;;  %v397_v8 = vpack.c.bf16 %v68_v4, %v67_v3  ;;  %v20_v12 = vld [vmem:[%s628_s0 + $0x28] sm:$0xff]  ;;  %v245_v16 = vld [vmem:[%s630_s2] ss:$0 sm:$0xff] }
  0x19   :  { %360 = vmatpush3.bf16.msra.mxu0 %v359_v57  ;;  %v367_v9 = vpack.c.bf16 %v36_v7, %v35_v6  ;;  %v18_v13 = vld [vmem:[%s628_s0 + $0x18] sm:$0xff]  ;;  %s404_s0 = scalar_lea.vmem %s235_s14, 256 }
  0x1a   :  { %362 = vmatprep.subr.bf16.mxu0 %v361_v60  ;;  %p405_p0 = scmp.ne.s32.totalorder %s235_s14, %s404_s0  ;;  %p410_p2 = scmp.lt.s32.totalorder %s404_s0, %s404_s0 }
  0x1b   :  { %392 = vmatpush3.bf16.msra.mxu1 %v389_v56 }
  0x1c   :  { %394 = vmatprep.subr.bf16.mxu1 %v393_v1  ;;  %p411_p3 = por %p410_p2, %p409_p1 }
  0x1d   :  { %364 = vmatpush3.bf16.msra.mxu0 %v363_v2 }
  0x1e   :  { %366 = vmatprep.subr.bf16.mxu0 %v365_v5  ;;  %p412_p4 = pnand %p411_p3, %p405_p0 }
  0x1f   :  { %396 = vmatpush3.bf16.msra.mxu1 %v393_v1 }
  0x20   :  { %398 = vmatprep.subr.bf16.mxu1 %v397_v8 }
  0x21   :  { %368 = vmatpush3.bf16.msra.mxu0 %v367_v9 }
  0x23   :  { %400 = vmatpush3.bf16.msra.mxu1 %v397_v8 }
  0x24   :  { %141 = vmatmul.mubr.f32.vlgmr.msra.gmra.mrb[0].mxu0 %v15_v10 }
  0x25   :  { %145 = vmatprep.mubr.f32.mxu0 %v19_v11 }
  0x26   :  { %335 = vmatmul.mubr.f32.vlgmr.msra.gmra.mrb[0].mxu1 %v20_v12 }
  0x28   :  { %146 = vmatmul.mubr.f32.gmra.mrb[2].mxu0 %v18_v13 }
  0xf7   :  { %v278_v14 = vpop.f32.mrb[0].mxu0 }
  0xf8   :  { %v279_v15 = vpop.f32.mrb[1].mxu0 }
  0xf9   :  { %v280_v17 = vadd.f32 %v279_v15, %v278_v14  ;;  %v336_v18 = vpop.f32.mrb[0].mxu1 }
  0xfa   :  { %v217_v19 = vpop.f32.mrb[1].mxu1 }
  0xfb   :  { %v281_v20 = vpop.f32.mrb[2].mxu0  ;;  %v143_v21 = vadd.f32 %v280_v17, %v245_v16 }
  0xfc   :  { %v282_v22 = vpop.f32.mrb[3].mxu0 }
  0xfd   :  { %v283_v23 = vadd.f32 %v282_v22, %v281_v20  ;;  %v218_v24 = vadd.f32 %v217_v19, %v143_v21 }
  0xff   :  { %v148_v25 = vadd.f32 %v283_v23, %v245_v16  ;;  %227 = vst.msk [vmem:[#allocation2] sm:$0xff] %vm226_vm0, %v218_v24 }
 0x101   :  { %v223_v26 = vadd.f32 %v336_v18, %v148_v25 }
 0x103   :  { %228 = vst.msk [vmem:[#allocation2 + $0x8] sm:$0xff] %vm226_vm0, %v223_v26 }
 0x104   :  { %415 = shalt.err (!%p412_p4)
}
 0x105   :  { %s416_s16 = scalar_lea.hbm %s631_s3, 256 }
 0x106   :  { %p417_p5 = scmp.ne.s32.totalorder %s631_s3, %s416_s16  ;;  %p420_p6 = scmp.lt.u32.totalorder %s416_s16, %s631_s3 }
 0x108   :  { %p422_p7 = pnand %p420_p6, %p417_p5 }
 0x10a   :  { %425 = shalt.err (!%p422_p7)
}
 0x10b   :  { %s429_s21 = smov 128   ;;  %s430_s22 = smov 8  }
 0x10c   :  { %240 = dma.vmem_to_hbm [thread:$0]  %s235_s14, 256, %s631_s3, [#allocation3], %s429_s21, %s429_s21, %s430_s22  }
 0x10d   :  { %426 = dma.done.wait [#allocation3], 256  }
 0x10e   :  { %427 = vsyncadd [#allocation3], 4294967040 }
 0x10f   :  { %244 = vsyncpa [#allocation3], 1 }

</bundles_post_ra>
